<compile_context>
chip_gen: v7x
topology: tpu7x:2x2x1
jax: 0.10.0
libtpu: 0.0.40
codegen_flags: <defaults>
</compile_context>

<pallas_src>
import jax
import jax.numpy as jnp
from jax.experimental import pallas as pl
from jax.experimental.pallas import tpu as pltpu

HIDDEN = 256


def _round_up(x, m):
    return ((x + m - 1) // m) * m


def q_network_kernel(xt_ref, w1_ref, b1_ref, w2_ref, b2_ref, w3_ref, b3_ref,
                     out_ref):
    """One batch tile, batch on the lane axis.

    xt_ref : (in_dim, TB)    compute dtype (f32 or bf16)
    w1_ref : (256, in_dim)   compute dtype (PyTorch [out, in] layout)
    b1_ref : (256, 1)        f32
    w2_ref : (256, 256)      compute dtype
    b2_ref : (256, 1)        f32
    w3_ref : (256, 1)        f32
    b3_ref : (1, 1)          f32, SMEM scalar
    out_ref: (1, TB)         f32, lane-dense (one Q value per batch column)
    """
    x = xt_ref[...]

    # fc1 + ReLU  (MXU, f32 accumulation; bias/ReLU in f32)
    h1 = jnp.dot(w1_ref[...], x, preferred_element_type=jnp.float32)
    h1 = jnp.maximum(h1 + b1_ref[...], 0.0)                      # (256, TB) f32

    # fc2 + ReLU
    h2 = jnp.dot(w2_ref[...], h1.astype(w2_ref.dtype),
                 preferred_element_type=jnp.float32)
    h2 = jnp.maximum(h2 + b2_ref[...], 0.0)                      # (256, TB) f32

    # fc3: output width 1 -> keep it off the MXU.  VPU multiply by the weight
    # column, then reduce over the hidden (sublane) axis -> lane-dense (1, TB).
    q = jnp.sum(h2 * w3_ref[...], axis=0, keepdims=True)         # (1, TB)
    out_ref[...] = (q + b3_ref[0, 0]).astype(out_ref.dtype)


def q_network_forward(x, params, *, block_b=2048, compute_dtype=jnp.bfloat16):
    """x: [B, state_dim + action_dim] f32 -> [B, 1] f32."""
    w1, b1, w2, b2, w3, b3 = params
    B, in_dim = x.shape
    hidden = w1.shape[0]

    # Batch tile lives on the lane axis -> multiple of 128; cap at block_b.
    tb = min(_round_up(block_b, 128), _round_up(B, 128))
    b_pad = _round_up(B, tb)
    num_tiles = b_pad // tb

    # Wrapper-side layout plumbing: pad the batch to a tile multiple and put
    # batch on the fast lane axis so every kernel store is lane-dense.
    x_pad = jnp.pad(x, ((0, b_pad - B), (0, 0)))
    xt = x_pad.T.astype(compute_dtype)                  # (in_dim, B_pad)

    w1c = w1.astype(compute_dtype)                      # (256, in_dim)
    w2c = w2.astype(compute_dtype)                      # (256, 256)
    w3c = w3.reshape(-1, 1).astype(jnp.float32)         # (256, 1)
    b1c = b1.reshape(-1, 1).astype(jnp.float32)         # (256, 1)
    b2c = b2.reshape(-1, 1).astype(jnp.float32)         # (256, 1)
    b3c = b3.reshape(1, 1).astype(jnp.float32)          # (1, 1) -> SMEM

    const = lambda i: (0, 0)   # weights/biases: fetched once, stay resident

    grid_spec = pltpu.PrefetchScalarGridSpec(
        num_scalar_prefetch=0,
        grid=(num_tiles,),
        in_specs=[
            pl.BlockSpec((in_dim, tb), lambda i: (0, i)),        # x tile
            pl.BlockSpec((hidden, in_dim), const),               # w1
            pl.BlockSpec((hidden, 1), const),                    # b1
            pl.BlockSpec((hidden, hidden), const),               # w2
            pl.BlockSpec((hidden, 1), const),                    # b2
            pl.BlockSpec((hidden, 1), const),                    # w3
            pl.BlockSpec(memory_space=pltpu.MemorySpace.SMEM),   # b3 scalar
        ],
        out_specs=pl.BlockSpec((1, tb), lambda i: (0, i)),
    )

    flops = 2 * b_pad * (hidden * in_dim + hidden * hidden + hidden)
    bytes_accessed = int(
        xt.size * xt.dtype.itemsize
        + b_pad * 4
        + w1c.size * w1c.dtype.itemsize
        + w2c.size * w2c.dtype.itemsize
        + (w3c.size + b1c.size + b2c.size + b3c.size) * 4)

    out = pl.pallas_call(
        q_network_kernel,
        out_shape=jax.ShapeDtypeStruct((1, b_pad), jnp.float32),
        grid_spec=grid_spec,
        compiler_params=pltpu.CompilerParams(
            dimension_semantics=("parallel",)),
        cost_estimate=pl.CostEstimate(
            flops=int(flops), transcendentals=0,
            bytes_accessed=bytes_accessed),
    )(xt, w1c, b1c, w2c, b2c, w3c, b3c)

    return out[0, :B].reshape(B, 1)


def init_params(key, state_dim, action_dim):
    """PyTorch nn.Linear layout ([out, in]) and default init U(+-1/sqrt(fan_in))."""
    in_dim = state_dim + action_dim
    dims = [(in_dim, HIDDEN), (HIDDEN, HIDDEN), (HIDDEN, 1)]
    params = []
    for fan_in, fan_out in dims:
        key, kw, kb = jax.random.split(key, 3)
        bound = 1.0 / jnp.sqrt(jnp.float32(fan_in))
        w = jax.random.uniform(kw, (fan_out, fan_in), jnp.float32, -bound, bound)
        b = jax.random.uniform(kb, (fan_out, 1), jnp.float32, -bound, bound)
        params.extend([w, b])
    return tuple(params)


def q_network_ref(x, params):
    """Pure-JAX f32 reference matching the PyTorch module."""
    w1, b1, w2, b2, w3, b3 = params
    h1 = jnp.maximum(x @ w1.T + b1[:, 0], 0.0)
    h2 = jnp.maximum(h1 @ w2.T + b2[:, 0], 0.0)
    return h2 @ w3.T + b3[:, 0]


if __name__ == "__main__":
    state_dim, action_dim, batch = 8, 4, 8
    key = jax.random.PRNGKey(0)
    key_p, key_x = jax.random.split(key)
    params = init_params(key_p, state_dim, action_dim)
    x = jax.random.normal(key_x, (batch, state_dim + action_dim), jnp.float32)

    ref = q_network_ref(x, params)

    # f32 MXU path: matches the f32 reference tightly.
    out_f32 = jax.block_until_ready(
        q_network_forward(x, params, compute_dtype=jnp.float32))
    assert out_f32.shape == (batch, 1)
    assert jnp.allclose(out_f32, ref, atol=1e-4, rtol=1e-4), (out_f32, ref)

    # bf16 MXU inputs / f32 accumulation: fast path on v5e/v6e/v7x.
    out_bf16 = jax.block_until_ready(
        q_network_forward(x, params, compute_dtype=jnp.bfloat16))
    assert out_bf16.shape == (batch, 1)
    assert jnp.allclose(out_bf16, ref, atol=3e-2, rtol=3e-2), (out_bf16, ref)

    print("KERNEL_OK")
</pallas_src>

<mosaic_0001>
module attributes {stable_mosaic.version = 11 : i64} {
  func.func @q_network_kernel(%arg0: i32, %arg1: memref<12x128xf32, #tpu.memory_space<vmem>>, %arg2: memref<256x12xf32, #tpu.memory_space<vmem>>, %arg3: memref<256x1xf32, #tpu.memory_space<vmem>>, %arg4: memref<256x256xf32, #tpu.memory_space<vmem>>, %arg5: memref<256x1xf32, #tpu.memory_space<vmem>>, %arg6: memref<256x1xf32, #tpu.memory_space<vmem>>, %arg7: memref<1x1xf32, #tpu.memory_space<smem>>, %arg8: memref<1x128xf32, #tpu.memory_space<vmem>>) attributes {dimension_semantics = [#tpu.dimension_semantics<parallel>], iteration_bounds = array<i64: 1>, scalar_prefetch = 0 : i64, scratch_operands = 0 : i64, tpu.core_type = #tpu.core_type<tc>, window_params = [{transform_indices = @transform_0, window_bounds = array<i64: 12, 128>}, {pipeline_mode = #tpu.pipeline_mode<synchronous>, transform_indices = @transform_1, window_bounds = array<i64: 256, 12>}, {pipeline_mode = #tpu.pipeline_mode<synchronous>, transform_indices = @transform_2, window_bounds = array<i64: 256, 1>}, {pipeline_mode = #tpu.pipeline_mode<synchronous>, transform_indices = @transform_3, window_bounds = array<i64: 256, 256>}, {pipeline_mode = #tpu.pipeline_mode<synchronous>, transform_indices = @transform_4, window_bounds = array<i64: 256, 1>}, {pipeline_mode = #tpu.pipeline_mode<synchronous>, transform_indices = @transform_5, window_bounds = array<i64: 256, 1>}, {transform_indices = @transform_6, window_bounds = array<i64: 1, 1>}, {transform_indices = @transform_7, window_bounds = array<i64: 1, 128>}]} {
    %c0 = arith.constant 0 : index
    %c0_0 = arith.constant 0 : index
    %0 = vector.load %arg1[%c0, %c0_0] : memref<12x128xf32, #tpu.memory_space<vmem>>, vector<12x128xf32>
    %c0_1 = arith.constant 0 : index
    %c0_2 = arith.constant 0 : index
    %1 = vector.load %arg2[%c0_1, %c0_2] : memref<256x12xf32, #tpu.memory_space<vmem>>, vector<256x12xf32>
    %cst = arith.constant dense<0.000000e+00> : vector<256x128xf32>
    %2 = tpu.matmul %1, %0, %cst {dimension_numbers = #tpu.dot_dimension_numbers<[1], [0], [0], [1], [0, 0, 1, 1], [], []>} : vector<256x12xf32>, vector<12x128xf32>, vector<256x128xf32> -> vector<256x128xf32>
    %c0_3 = arith.constant 0 : index
    %c0_4 = arith.constant 0 : index
    %3 = vector.load %arg3[%c0_3, %c0_4] : memref<256x1xf32, #tpu.memory_space<vmem>>, vector<256x1xf32>
    %4 = vector.broadcast %3 : vector<256x1xf32> to vector<256x128xf32>
    %5 = arith.addf %2, %4 : vector<256x128xf32>
    %cst_5 = arith.constant 0.000000e+00 : f32
    %6 = vector.broadcast %cst_5 : f32 to vector<256x128xf32>
    %7 = arith.maximumf %5, %6 : vector<256x128xf32>
    %c0_6 = arith.constant 0 : index
    %c0_7 = arith.constant 0 : index
    %8 = vector.load %arg4[%c0_6, %c0_7] : memref<256x256xf32, #tpu.memory_space<vmem>>, vector<256x256xf32>
    %cst_8 = arith.constant dense<0.000000e+00> : vector<256x128xf32>
    %9 = tpu.matmul %8, %7, %cst_8 {dimension_numbers = #tpu.dot_dimension_numbers<[1], [0], [0], [1], [0, 0, 1, 1], [], []>} : vector<256x256xf32>, vector<256x128xf32>, vector<256x128xf32> -> vector<256x128xf32>
    %c0_9 = arith.constant 0 : index
    %c0_10 = arith.constant 0 : index
    %10 = vector.load %arg5[%c0_9, %c0_10] : memref<256x1xf32, #tpu.memory_space<vmem>>, vector<256x1xf32>
    %11 = vector.broadcast %10 : vector<256x1xf32> to vector<256x128xf32>
    %12 = arith.addf %9, %11 : vector<256x128xf32>
    %cst_11 = arith.constant 0.000000e+00 : f32
    %13 = vector.broadcast %cst_11 : f32 to vector<256x128xf32>
    %14 = arith.maximumf %12, %13 : vector<256x128xf32>
    %c0_12 = arith.constant 0 : index
    %c0_13 = arith.constant 0 : index
    %15 = vector.load %arg6[%c0_12, %c0_13] : memref<256x1xf32, #tpu.memory_space<vmem>>, vector<256x1xf32>
    %16 = vector.broadcast %15 : vector<256x1xf32> to vector<256x128xf32>
    %17 = arith.mulf %14, %16 : vector<256x128xf32>
    %cst_14 = arith.constant dense<0.000000e+00> : vector<128xf32>
    %18 = vector.multi_reduction <add>, %17, %cst_14 [0] : vector<256x128xf32> to vector<128xf32>
    %19 = vector.shape_cast %18 : vector<128xf32> to vector<1x128xf32>
    %c0_15 = arith.constant 0 : index
    %c0_16 = arith.constant 0 : index
    %20 = memref.load %arg7[%c0_15, %c0_16] : memref<1x1xf32, #tpu.memory_space<smem>>
    %21 = vector.broadcast %20 : f32 to vector<1x128xf32>
    %22 = arith.addf %19, %21 : vector<1x128xf32>
    %c0_17 = arith.constant 0 : index
    %c0_18 = arith.constant 0 : index
    %23 = vector.load %arg8[%c0_17, %c0_18] : memref<1x128xf32, #tpu.memory_space<vmem>>, vector<1x128xf32>
    tpu.vector_store %arg8[%c0_17, %c0_18], %22 {strides = array<i32>} : memref<1x128xf32, #tpu.memory_space<vmem>>, vector<1x128xf32>,
    return
  }
  func.func @transform_0(%arg0: i32) -> (i32, i32) {
    %c0_i32 = arith.constant 0 : i32
    %c0_i32_0 = arith.constant 0 : i32
    return %c0_i32, %arg0 : i32, i32
  }
  func.func @transform_1(%arg0: i32) -> (i32, i32) {
    %c0_i32 = arith.constant 0 : i32
    %c0_i32_0 = arith.constant 0 : i32
    %c0_i32_1 = arith.constant 0 : i32
    return %c0_i32, %c0_i32_0 : i32, i32
  }
  func.func @transform_2(%arg0: i32) -> (i32, i32) {
    %c0_i32 = arith.constant 0 : i32
    %c0_i32_0 = arith.constant 0 : i32
    %c0_i32_1 = arith.constant 0 : i32
    return %c0_i32, %c0_i32_0 : i32, i32
  }
  func.func @transform_3(%arg0: i32) -> (i32, i32) {
    %c0_i32 = arith.constant 0 : i32
    %c0_i32_0 = arith.constant 0 : i32
    %c0_i32_1 = arith.constant 0 : i32
    return %c0_i32, %c0_i32_0 : i32, i32
  }
  func.func @transform_4(%arg0: i32) -> (i32, i32) {
    %c0_i32 = arith.constant 0 : i32
    %c0_i32_0 = arith.constant 0 : i32
    %c0_i32_1 = arith.constant 0 : i32
    return %c0_i32, %c0_i32_0 : i32, i32
  }
  func.func @transform_5(%arg0: i32) -> (i32, i32) {
    %c0_i32 = arith.constant 0 : i32
    %c0_i32_0 = arith.constant 0 : i32
    %c0_i32_1 = arith.constant 0 : i32
    return %c0_i32, %c0_i32_0 : i32, i32
  }
  func.func @transform_6(%arg0: i32) -> (i32, i32) {
    %c0_i32 = arith.constant 0 : i32
    %c0_i32_0 = arith.constant 0 : i32
    %c0_i32_1 = arith.constant 0 : i32
    return %c0_i32, %c0_i32_0 : i32, i32
  }
  func.func @transform_7(%arg0: i32) -> (i32, i32) {
    %c0_i32 = arith.constant 0 : i32
    %c0_i32_0 = arith.constant 0 : i32
    return %c0_i32, %arg0 : i32, i32
  }
}

</mosaic_0001>

<bundles_post_ra>
// kernel: tpu_custom_call.1
= control target key start
LH: loop header
LB: loop body
LE: loop exit
PB: predicated region body
PF: predicated region fallthrough
CT: control target
= control target key end

     0   :  { %vm351_vm0 = vcmask 1043456   ;;  %v1639_v3 = vmov 0   ;;  %vm1640_vm1 = vmmov 1   ;;  %vm254_vm3 = vcmask 97280   ;;  %s2506_s0 = inlined_call_operand.vmem [shape: f32[12,128], index: 0, kind: input, shape index: {}]   ;;  %s2507_s1 = inlined_call_operand.vmem [shape: f32[256,12], index: 1, kind: input, shape index: {}]   ;;  %s2508_s2 = inlined_call_operand.vmem [shape: f32[256,1], index: 2, kind: input, shape index: {}]   ;;  %s2509_s3 = inlined_call_operand.vmem [shape: f32[256,256], index: 3, kind: input, shape index: {}]   ;;  %s2510_s4 = inlined_call_operand.vmem [shape: f32[256,1], index: 4, kind: input, shape index: {}]   ;;  %s2511_s5 = inlined_call_operand.vmem [shape: f32[256,1], index: 5, kind: input, shape index: {}]   ;;  %s2512_s6 = inlined_call_operand.<no memory space> [shape: f32[1,1], index: 6, kind: input, shape index: {}]   ;;  %s2513_s7 = inlined_call_operand.hbm [shape: f32[1,128], index: 7, kind: output, shape index: {}]  }
   0x1   :  { %v64_v0 = vld [vmem:[%s2508_s2 + $0x10] sm:$0xff]  ;;  %v62_v1 = vld [vmem:[%s2508_s2] sm:$0xff]  ;;  %1614 = vset.pattern.permute.xlu1 %v1639_v3  ;;  %1613 = vset.pattern.permute.xlu0 %v1639_v3  ;;  %v29_v4 = vld [vmem:[%s2506_s0 + $0x8] sm:$0xf] }
   0x2   :  { %v28_v2 = vld [vmem:[%s2506_s0] sm:$0xff]  ;;  %vm1524_vm2 = vmpackc.low %vm351_vm0, %vm1640_vm1  ;;  %106 = vperm.xlu1 %1614, %v64_v0   ;;  %96 = vperm.xlu0 %1613, %v62_v1   ;;  %v65_v7 = vld [vmem:[%s2508_s2 + $0x18] sm:$0xff] }
   0x3   :  { %v1523_v5 = vpack.c.bf16 %v29_v4, %v28_v2  ;;  %v30_v6 = vld [vmem:[%s2507_s1] sm:$0xff]  ;;  %v63_v8 = vld [vmem:[%s2508_s2 + $0x8] sm:$0xff]  ;;  %v32_v10 = vld [vmem:[%s2507_s1 + $0x10] sm:$0xff] }
   0x4   :  { %1475 = vmatprep.mubr.msk.f32.mxu0 %vm254_vm3, %v30_v6  ;;  %v31_v9 = vld [vmem:[%s2507_s1 + $0x8] sm:$0xff]  ;;  %v66_v12 = vld [vmem:[%s2508_s2 + $0x20] sm:$0xff]  ;;  %v33_v13 = vld [vmem:[%s2507_s1 + $0x18] sm:$0xff] }
   0x5   :  { %1525 = vmatprep.subr.msk.bf16.mxu0 %vm1524_vm2, %v1523_v5  ;;  %v67_v11 = vld [vmem:[%s2508_s2 + $0x28] sm:$0xff]  ;;  %v34_v14 = vld [vmem:[%s2507_s1 + $0x20] sm:$0xff]  ;;  %v69_v15 = vld [vmem:[%s2508_s2 + $0x38] sm:$0xff] }
   0x6   :  { %1528 = vmatpush3.bf16.msk.msra.mxu0 %vm1524_vm2, %v1523_v5  ;;  %111 = vperm.xlu1 %1614, %v65_v7   ;;  %v68_v16 = vld [vmem:[%s2508_s2 + $0x30] sm:$0xff]  ;;  %v35_v17 = vld [vmem:[%s2507_s1 + $0x28] sm:$0xff]  ;;  %v70_v20 = vld [vmem:[%s2508_s2 + $0x40] sm:$0xff] }
   0x7   :  { %101 = vperm.xlu0 %1613, %v63_v8   ;;  %v36_v18 = vld [vmem:[%s2507_s1 + $0x30] sm:$0xff]  ;;  %v71_v19 = vld [vmem:[%s2508_s2 + $0x48] sm:$0xff]  ;;  %v37_v21 = vld [vmem:[%s2507_s1 + $0x38] sm:$0xff] }
   0x8   :  { %v38_v22 = vld [vmem:[%s2507_s1 + $0x40] sm:$0xff]  ;;  %v73_v23 = vld [vmem:[%s2508_s2 + $0x58] sm:$0xff]  ;;  %v72_v24 = vld [vmem:[%s2508_s2 + $0x50] sm:$0xff] }
   0x9   :  { %1476 = vmatmul.mubr.msk.f32.vlgmr.msra.gmra.mrb[0].mxu0 %vm254_vm3, %v31_v9  ;;  %v39_v25 = vld [vmem:[%s2507_s1 + $0x48] sm:$0xff]  ;;  %v40_v26 = vld [vmem:[%s2507_s1 + $0x50] sm:$0xff]  ;;  %v74_v28 = vld [vmem:[%s2508_s2 + $0x60] sm:$0xff] }
   0xa   :  { %1478 = vmatprep.mubr.msk.f32.mxu0 %vm254_vm3, %v32_v10  ;;  %121 = vperm.xlu1 %1614, %v67_v11   ;;  %v75_v27 = vld [vmem:[%s2508_s2 + $0x68] sm:$0xff]  ;;  %v41_v29 = vld [vmem:[%s2507_s1 + $0x58] sm:$0xff]  ;;  %v42_v30 = vld [vmem:[%s2507_s1 + $0x60] sm:$0xff] }
   0xb   :  { %116 = vperm.xlu0 %1613, %v66_v12   ;;  %v77_v31 = vld [vmem:[%s2508_s2 + $0x78] sm:$0xff]  ;;  %v76_v32 = vld [vmem:[%s2508_s2 + $0x70] sm:$0xff]  ;;  %v43_v33 = vld [vmem:[%s2507_s1 + $0x68] sm:$0xff] }
   0xc   :  { %v44_v34 = vld [vmem:[%s2507_s1 + $0x70] sm:$0xff]  ;;  %v79_v35 = vld [vmem:[%s2508_s2 + $0x88] sm:$0xff]  ;;  %v78_v36 = vld [vmem:[%s2508_s2 + $0x80] sm:$0xff] }
   0xd   :  { %1479 = vmatmul.mubr.msk.f32.gmra.mrb[2].mxu0 %vm254_vm3, %v33_v13  ;;  %v45_v37 = vld [vmem:[%s2507_s1 + $0x78] sm:$0xff]  ;;  %v46_v38 = vld [vmem:[%s2507_s1 + $0x80] sm:$0xff]  ;;  %v80_v40 = vld [vmem:[%s2508_s2 + $0x90] sm:$0xff] }
   0xe   :  { %1481 = vmatprep.mubr.msk.f32.mxu0 %vm254_vm3, %v34_v14  ;;  %131 = vperm.xlu1 %1614, %v69_v15   ;;  %v81_v39 = vld [vmem:[%s2508_s2 + $0x98] sm:$0xff]  ;;  %v47_v41 = vld [vmem:[%s2507_s1 + $0x88] sm:$0xff]  ;;  %v48_v42 = vld [vmem:[%s2507_s1 + $0x90] sm:$0xff] }
   0xf   :  { %126 = vperm.xlu0 %1613, %v68_v16   ;;  %v83_v43 = vld [vmem:[%s2508_s2 + $0xa8] sm:$0xff]  ;;  %v82_v44 = vld [vmem:[%s2508_s2 + $0xa0] sm:$0xff] }
  0x11   :  { %1482 = vmatmul.mubr.msk.f32.gmra.mrb[4].mxu0 %vm254_vm3, %v35_v17 }
  0x12   :  { %1484 = vmatprep.mubr.msk.f32.mxu0 %vm254_vm3, %v36_v18  ;;  %141 = vperm.xlu1 %1614, %v71_v19  }
  0x13   :  { %136 = vperm.xlu0 %1613, %v70_v20  }
  0x15   :  { %1485 = vmatmul.mubr.msk.f32.gmra.mrb[6].mxu0 %vm254_vm3, %v37_v21 }
  0x16   :  { %1487 = vmatprep.mubr.msk.f32.mxu0 %vm254_vm3, %v38_v22  ;;  %151 = vperm.xlu1 %1614, %v73_v23  }
  0x17   :  { %146 = vperm.xlu0 %1613, %v72_v24  }
  0x19   :  { %1488 = vmatmul.mubr.msk.f32.gmra.mrb[8].mxu0 %vm254_vm3, %v39_v25 }
  0x1a   :  { %1490 = vmatprep.mubr.msk.f32.mxu0 %vm254_vm3, %v40_v26  ;;  %161 = vperm.xlu1 %1614, %v75_v27  }
  0x1b   :  { %156 = vperm.xlu0 %1613, %v74_v28  }
  0x1d   :  { %1491 = vmatmul.mubr.msk.f32.gmra.mrb[10].mxu0 %vm254_vm3, %v41_v29 }
  0x1e   :  { %1493 = vmatprep.mubr.msk.f32.mxu0 %vm254_vm3, %v42_v30  ;;  %171 = vperm.xlu1 %1614, %v77_v31  }
  0x1f   :  { %166 = vperm.xlu0 %1613, %v76_v32  }
  0x21   :  { %1494 = vmatmul.mubr.msk.f32.gmra.mrb[12].mxu0 %vm254_vm3, %v43_v33 }
  0x22   :  { %1496 = vmatprep.mubr.msk.f32.mxu0 %vm254_vm3, %v44_v34  ;;  %181 = vperm.xlu1 %1614, %v79_v35  }
  0x23   :  { %176 = vperm.xlu0 %1613, %v78_v36  }
  0x25   :  { %1497 = vmatmul.mubr.msk.f32.gmra.mrb[14].mxu0 %vm254_vm3, %v45_v37 }
  0x26   :  { %1499 = vmatprep.mubr.msk.f32.mxu0 %vm254_vm3, %v46_v38  ;;  %191 = vperm.xlu1 %1614, %v81_v39  }
  0x27   :  { %186 = vperm.xlu0 %1613, %v80_v40  }
  0x28   :  { %13 = vsyncpa [#allocation4], 0  ;;  %v49_v45 = vld [vmem:[%s2507_s1 + $0x98] sm:$0xff]  ;;  %v50_v46 = vld [vmem:[%s2507_s1 + $0xa0] sm:$0xff]  ;;  %v1641_v24 = vmov 0.0|0.0   ;;  %s1642_s23 = smov [#allocation3]  }
  0x29   :  { %1500 = vmatmul.mubr.msk.f32.gmra.mrb[16].mxu0 %vm254_vm3, %v47_v41  ;;  %v85_v47 = vld [vmem:[%s2508_s2 + $0xb8] sm:$0xff]  ;;  %v84_v48 = vld [vmem:[%s2508_s2 + $0xb0] sm:$0xff]  ;;  %v51_v49 = vld [vmem:[%s2507_s1 + $0xa8] sm:$0xff]  ;;  %1577 = vmatprep.subr.bf16.mxu1 %v1641_v24  ;;  %s1396_s24 = sshll.u32 %s1642_s23, 4  ;;  %s1397_s24 = int_to_ptr.vmem [resolvable:$true] %s1396_s24 }
  0x2a   :  { %1502 = vmatprep.mubr.msk.f32.mxu0 %vm254_vm3, %v48_v42  ;;  %201 = vperm.xlu1 %1614, %v83_v43   ;;  %v52_v50 = vld [vmem:[%s2507_s1 + $0xb0] sm:$0xff]  ;;  %v87_v51 = vld [vmem:[%s2508_s2 + $0xc8] sm:$0xff]  ;;  %v86_v52 = vld [vmem:[%s2508_s2 + $0xc0] sm:$0xff]  ;;  %s1615_s25 = scalar_lea.vmem %s1397_s24, 16  ;;  %s1619_s26 = scalar_lea.vmem %s1397_s24, 32 }
  0x2b   :  { %196 = vperm.xlu0 %1613, %v82_v44   ;;  %v53_v53 = vld [vmem:[%s2507_s1 + $0xb8] sm:$0xff]  ;;  %v54_v54 = vld [vmem:[%s2507_s1 + $0xc0] sm:$0xff]  ;;  %v88_v56 = vld [vmem:[%s2508_s2 + $0xd0] sm:$0xff]  ;;  %1529 = vmatprep.subr.bf16.mxu0 %v1641_v24  ;;  %p1616_p0 = scmp.ne.s32.totalorder %s1397_s24, %s1615_s25  ;;  %p1620_p1 = scmp.lt.s32.totalorder %s1397_s24, %s1397_s24 }
  0x2c   :  { %v89_v55 = vld [vmem:[%s2508_s2 + $0xd8] sm:$0xff]  ;;  %v55_v57 = vld [vmem:[%s2507_s1 + $0xc8] sm:$0xff]  ;;  %v56_v58 = vld [vmem:[%s2507_s1 + $0xd0] sm:$0xff]  ;;  %p1621_p2 = scmp.lt.s32.totalorder %s1619_s26, %s1615_s25 }
  0x2d   :  { %1503 = vmatmul.mubr.msk.f32.gmra.mrb[18].mxu0 %vm254_vm3, %v49_v45  ;;  %v91_v59 = vld [vmem:[%s2508_s2 + $0xe8] sm:$0xff]  ;;  %v90_v60 = vld [vmem:[%s2508_s2 + $0xe0] sm:$0xff]  ;;  %v57_v61 = vld [vmem:[%s2507_s1 + $0xd8] sm:$0xff] }
  0x2e   :  { %1505 = vmatprep.mubr.msk.f32.mxu0 %vm254_vm3, %v50_v46  ;;  %211 = vperm.xlu1 %1614, %v85_v47   ;;  %v58_v62 = vld [vmem:[%s2507_s1 + $0xe0] sm:$0xff]  ;;  %v93_v63 = vld [vmem:[%s2508_s2 + $0xf8] sm:$0xff]  ;;  %v92_v0 = vld [vmem:[%s2508_s2 + $0xf0] sm:$0xff]  ;;  %p1622_p3 = por %p1621_p2, %p1620_p1 }
  0x2f   :  { %206 = vperm.xlu0 %1613, %v84_v48   ;;  %v59_v1 = vld [vmem:[%s2507_s1 + $0xe8] sm:$0xff]  ;;  %v60_v2 = vld [vmem:[%s2507_s1 + $0xf0] sm:$0xff]  ;;  %v676_v4 = vld [vmem:[%s2510_s4] sm:$0xff] }
  0x30   :  { %v677_v3 = vld [vmem:[%s2510_s4 + $0x8] sm:$0xff]  ;;  %v61_v5 = vld [vmem:[%s2507_s1 + $0xf8] sm:$0xff]  ;;  %v678_v7 = vld [vmem:[%s2510_s4 + $0x10] sm:$0xff]  ;;  %p1623_p4 = pnand %p1622_p3, %p1616_p0 }
  0x31   :  { %1506 = vmatmul.mubr.msk.f32.gmra.mrb[20].mxu0 %vm254_vm3, %v51_v49  ;;  %v679_v6 = vld [vmem:[%s2510_s4 + $0x18] sm:$0xff]  ;;  %v681_v8 = vld [vmem:[%s2510_s4 + $0x28] sm:$0xff]  ;;  %v680_v9 = vld [vmem:[%s2510_s4 + $0x20] sm:$0xff] }
  0x32   :  { %1508 = vmatprep.mubr.msk.f32.mxu0 %vm254_vm3, %v52_v50  ;;  %221 = vperm.xlu1 %1614, %v87_v51   ;;  %v683_v10 = vld [vmem:[%s2510_s4 + $0x38] sm:$0xff]  ;;  %v682_v11 = vld [vmem:[%s2510_s4 + $0x30] sm:$0xff]  ;;  %v685_v12 = vld [vmem:[%s2510_s4 + $0x48] sm:$0xff] }
  0x33   :  { %216 = vperm.xlu0 %1613, %v86_v52   ;;  %v684_v13 = vld [vmem:[%s2510_s4 + $0x40] sm:$0xff]  ;;  %v687_v14 = vld [vmem:[%s2510_s4 + $0x58] sm:$0xff]  ;;  %v686_v15 = vld [vmem:[%s2510_s4 + $0x50] sm:$0xff] }
  0x34   :  { %v689_v16 = vld [vmem:[%s2510_s4 + $0x68] sm:$0xff]  ;;  %v688_v17 = vld [vmem:[%s2510_s4 + $0x60] sm:$0xff]  ;;  %v691_v18 = vld [vmem:[%s2510_s4 + $0x78] sm:$0xff] }
  0x35   :  { %1509 = vmatmul.mubr.msk.f32.gmra.mrb[22].mxu0 %vm254_vm3, %v53_v53  ;;  %v690_v19 = vld [vmem:[%s2510_s4 + $0x70] sm:$0xff]  ;;  %v693_v20 = vld [vmem:[%s2510_s4 + $0x88] sm:$0xff]  ;;  %v692_v21 = vld [vmem:[%s2510_s4 + $0x80] sm:$0xff] }
  0x36   :  { %1511 = vmatprep.mubr.msk.f32.mxu0 %vm254_vm3, %v54_v54  ;;  %231 = vperm.xlu1 %1614, %v89_v55   ;;  %v695_v22 = vld [vmem:[%s2510_s4 + $0x98] sm:$0xff]  ;;  %v694_v23 = vld [vmem:[%s2510_s4 + $0x90] sm:$0xff]  ;;  %v697_v25 = vld [vmem:[%s2510_s4 + $0xa8] sm:$0xff] }
  0x37   :  { %226 = vperm.xlu0 %1613, %v88_v56   ;;  %v696_v26 = vld [vmem:[%s2510_s4 + $0xa0] sm:$0xff]  ;;  %v699_v27 = vld [vmem:[%s2510_s4 + $0xb8] sm:$0xff]  ;;  %v698_v28 = vld [vmem:[%s2510_s4 + $0xb0] sm:$0xff] }
  0x38   :  { %v701_v29 = vld [vmem:[%s2510_s4 + $0xc8] sm:$0xff]  ;;  %v700_v30 = vld [vmem:[%s2510_s4 + $0xc0] sm:$0xff]  ;;  %v703_v31 = vld [vmem:[%s2510_s4 + $0xd8] sm:$0xff] }
  0x39   :  { %1512 = vmatmul.mubr.msk.f32.gmra.mrb[24].mxu0 %vm254_vm3, %v55_v57  ;;  %v702_v32 = vld [vmem:[%s2510_s4 + $0xd0] sm:$0xff]  ;;  %v1126_v33 = vld [vmem:[%s2511_s5 + $0x8] sm:$0xff]  ;;  %v1125_v34 = vld [vmem:[%s2511_s5] sm:$0xff] }
  0x3a   :  { %1514 = vmatprep.mubr.msk.f32.mxu0 %vm254_vm3, %v56_v58  ;;  %241 = vperm.xlu1 %1614, %v91_v59   ;;  %v1128_v35 = vld [vmem:[%s2511_s5 + $0x18] sm:$0xff]  ;;  %v1127_v36 = vld [vmem:[%s2511_s5 + $0x10] sm:$0xff]  ;;  %v1130_v37 = vld [vmem:[%s2511_s5 + $0x28] sm:$0xff] }
  0x3b   :  { %236 = vperm.xlu0 %1613, %v90_v60   ;;  %v1129_v38 = vld [vmem:[%s2511_s5 + $0x20] sm:$0xff]  ;;  %v1132_v39 = vld [vmem:[%s2511_s5 + $0x38] sm:$0xff]  ;;  %v1131_v40 = vld [vmem:[%s2511_s5 + $0x30] sm:$0xff] }
  0x3c   :  { %v1134_v41 = vld [vmem:[%s2511_s5 + $0x48] sm:$0xff]  ;;  %v1133_v42 = vld [vmem:[%s2511_s5 + $0x40] sm:$0xff]  ;;  %v1136_v43 = vld [vmem:[%s2511_s5 + $0x58] sm:$0xff] }
  0x3d   :  { %1515 = vmatmul.mubr.msk.f32.gmra.mrb[26].mxu0 %vm254_vm3, %v57_v61  ;;  %v1135_v44 = vld [vmem:[%s2511_s5 + $0x50] sm:$0xff]  ;;  %v1138_v45 = vld [vmem:[%s2511_s5 + $0x68] sm:$0xff]  ;;  %v1137_v46 = vld [vmem:[%s2511_s5 + $0x60] sm:$0xff] }
  0x3e   :  { %1517 = vmatprep.mubr.msk.f32.mxu0 %vm254_vm3, %v58_v62  ;;  %251 = vperm.xlu1 %1614, %v93_v63   ;;  %v1140_v47 = vld [vmem:[%s2511_s5 + $0x78] sm:$0xff]  ;;  %v1139_v48 = vld [vmem:[%s2511_s5 + $0x70] sm:$0xff]  ;;  %v1142_v49 = vld [vmem:[%s2511_s5 + $0x88] sm:$0xff] }
  0x3f   :  { %246 = vperm.xlu0 %1613, %v92_v0   ;;  %v1141_v50 = vld [vmem:[%s2511_s5 + $0x80] sm:$0xff]  ;;  %v1144_v51 = vld [vmem:[%s2511_s5 + $0x98] sm:$0xff]  ;;  %v1143_v52 = vld [vmem:[%s2511_s5 + $0x90] sm:$0xff] }
  0x40   :  { %v1146_v53 = vld [vmem:[%s2511_s5 + $0xa8] sm:$0xff]  ;;  %v1145_v54 = vld [vmem:[%s2511_s5 + $0xa0] sm:$0xff]  ;;  %v643_v56 = vld [vmem:[%s2509_s3 + $0xf8] sm:$0xff] }
  0x41   :  { %1518 = vmatmul.mubr.msk.f32.gmra.mrb[28].mxu0 %vm254_vm3, %v59_v1  ;;  %v613_v55 = vld [vmem:[%s2509_s3 + $0x8] sm:$0xff]  ;;  %1007 = vmatprep.mubr.f32.mxu1 %v643_v56  ;;  %v1148_v57 = vld [vmem:[%s2511_s5 + $0xb8] sm:$0xff]  ;;  %v1147_v58 = vld [vmem:[%s2511_s5 + $0xb0] sm:$0xff] }
  0x42   :  { %1520 = vmatprep.mubr.msk.f32.mxu0 %vm254_vm3, %v60_v2  ;;  %715 = vperm.xlu1 %1614, %v677_v3   ;;  %v1150_v59 = vld [vmem:[%s2511_s5 + $0xc8] sm:$0xff]  ;;  %v1149_v60 = vld [vmem:[%s2511_s5 + $0xc0] sm:$0xff]  ;;  %v1151_v61 = vld [vmem:[%s2511_s5 + $0xd0] sm:$0xff] }
  0x43   :  { %710 = vperm.xlu0 %1613, %v676_v4   ;;  %v704_v62 = vld [vmem:[%s2510_s4 + $0xe0] sm:$0xff]  ;;  %v1152_v63 = vld [vmem:[%s2511_s5 + $0xd8] sm:$0xff]  ;;  %v705_v0 = vld [vmem:[%s2510_s4 + $0xe8] sm:$0xff] }
  0x44   :  { %v1153_v1 = vld [vmem:[%s2511_s5 + $0xe0] sm:$0xff]  ;;  %v706_v2 = vld [vmem:[%s2510_s4 + $0xf0] sm:$0xff]  ;;  %v1154_v3 = vld [vmem:[%s2511_s5 + $0xe8] sm:$0xff] }
  0x45   :  { %1521 = vmatmul.mubr.msk.f32.gmra.mrb[30].mxu0 %vm254_vm3, %v61_v5  ;;  %v707_v4 = vld [vmem:[%s2510_s4 + $0xf8] sm:$0xff] }
  0x46   :  { %725 = vperm.xlu1 %1614, %v679_v6   ;;  %932 = vmatprep.mubr.f32.mxu0 %v613_v55  ;;  %v1156_v5 = vld [vmem:[%s2511_s5 + $0xf8] sm:$0xff]  ;;  %v1155_v6 = vld [vmem:[%s2511_s5 + $0xf0] sm:$0xff] }
  0x47   :  { %720 = vperm.xlu0 %1613, %v678_v7  }
  0x4a   :  { %735 = vperm.xlu1 %1614, %v681_v8  }
  0x4b   :  { %730 = vperm.xlu0 %1613, %v680_v9  }
  0x4e   :  { %745 = vperm.xlu1 %1614, %v683_v10  }
  0x4f   :  { %740 = vperm.xlu0 %1613, %v682_v11  }
  0x52   :  { %755 = vperm.xlu1 %1614, %v685_v12  }
  0x53   :  { %750 = vperm.xlu0 %1613, %v684_v13  }
  0x56   :  { %765 = vperm.xlu1 %1614, %v687_v14  }
  0x57   :  { %760 = vperm.xlu0 %1613, %v686_v15  }
  0x5a   :  { %775 = vperm.xlu1 %1614, %v689_v16  }
  0x5b   :  { %770 = vperm.xlu0 %1613, %v688_v17  }
  0x5e   :  { %785 = vperm.xlu1 %1614, %v691_v18  }
  0x5f   :  { %780 = vperm.xlu0 %1613, %v690_v19  }
  0x62   :  { %795 = vperm.xlu1 %1614, %v693_v20  }
  0x63   :  { %790 = vperm.xlu0 %1613, %v692_v21  }
  0x66   :  { %805 = vperm.xlu1 %1614, %v695_v22  }
  0x67   :  { %800 = vperm.xlu0 %1613, %v694_v23  }
  0x6a   :  { %815 = vperm.xlu1 %1614, %v697_v25  }
  0x6b   :  { %810 = vperm.xlu0 %1613, %v696_v26  }
  0x6e   :  { %825 = vperm.xlu1 %1614, %v699_v27  }
  0x6f   :  { %820 = vperm.xlu0 %1613, %v698_v28  }
  0x72   :  { %835 = vperm.xlu1 %1614, %v701_v29  }
  0x73   :  { %830 = vperm.xlu0 %1613, %v700_v30  }
  0x76   :  { %845 = vperm.xlu1 %1614, %v703_v31  }
  0x77   :  { %840 = vperm.xlu0 %1613, %v702_v32  }
  0x7a   :  { %1164 = vperm.xlu1 %1614, %v1126_v33  }
  0x7b   :  { %1159 = vperm.xlu0 %1613, %v1125_v34  }
  0x7e   :  { %1174 = vperm.xlu1 %1614, %v1128_v35  }
  0x7f   :  { %1169 = vperm.xlu0 %1613, %v1127_v36  }
  0x81   :  { %v107_v7 = vpop.permute.xlu1 %106  ;;  %v97_v8 = vpop.permute.xlu0 %96 }
  0x82   :  { %1184 = vperm.xlu1 %1614, %v1130_v37  }
  0x83   :  { %1179 = vperm.xlu0 %1613, %v1129_v38  }
  0x85   :  { %v112_v9 = vpop.permute.xlu1 %111 }
  0x86   :  { %1194 = vperm.xlu1 %1614, %v1132_v39   ;;  %v102_v10 = vpop.permute.xlu0 %101 }
  0x87   :  { %1189 = vperm.xlu0 %1613, %v1131_v40  }
  0x89   :  { %v122_v11 = vpop.permute.xlu1 %121 }
  0x8a   :  { %1204 = vperm.xlu1 %1614, %v1134_v41   ;;  %v117_v12 = vpop.permute.xlu0 %116 }
  0x8b   :  { %1199 = vperm.xlu0 %1613, %v1133_v42  }
  0x8d   :  { %v132_v13 = vpop.permute.xlu1 %131 }
  0x8e   :  { %1214 = vperm.xlu1 %1614, %v1136_v43   ;;  %v127_v14 = vpop.permute.xlu0 %126 }
  0x8f   :  { %1209 = vperm.xlu0 %1613, %v1135_v44  }
  0x91   :  { %v142_v15 = vpop.permute.xlu1 %141 }
  0x92   :  { %1224 = vperm.xlu1 %1614, %v1138_v45   ;;  %v137_v16 = vpop.permute.xlu0 %136 }
  0x93   :  { %1219 = vperm.xlu0 %1613, %v1137_v46  }
  0x95   :  { %v152_v17 = vpop.permute.xlu1 %151 }
  0x96   :  { %1234 = vperm.xlu1 %1614, %v1140_v47   ;;  %v147_v19 = vpop.permute.xlu0 %146 }
  0x97   :  { %1229 = vperm.xlu0 %1613, %v1139_v48  }
  0x99   :  { %v162_v29 = vpop.permute.xlu1 %161 }
  0x9a   :  { %1244 = vperm.xlu1 %1614, %v1142_v49   ;;  %v157_v32 = vpop.permute.xlu0 %156 }
  0x9b   :  { %1239 = vperm.xlu0 %1613, %v1141_v50  }
  0x9d   :  { %v172_v41 = vpop.permute.xlu1 %171 }
  0x9e   :  { %1254 = vperm.xlu1 %1614, %v1144_v51   ;;  %v167_v44 = vpop.permute.xlu0 %166 }
  0x9f   :  { %1249 = vperm.xlu0 %1613, %v1143_v52  }
  0xa2   :  { %1264 = vperm.xlu1 %1614, %v1146_v53  }
  0xa3   :  { %1259 = vperm.xlu0 %1613, %v1145_v54   ;;  %v182_v54 = vpop.permute.xlu1 %181 }
  0xa6   :  { %1274 = vperm.xlu1 %1614, %v1148_v57   ;;  %v177_v57 = vpop.permute.xlu0 %176 }
  0xa7   :  { %1269 = vperm.xlu0 %1613, %v1147_v58  }
  0xaa   :  { %1284 = vperm.xlu1 %1614, %v1150_v59  }
  0xab   :  { %1279 = vperm.xlu0 %1613, %v1149_v60  }
  0xae   :  { %1289 = vperm.xlu1 %1614, %v1151_v61  }
  0xaf   :  { %850 = vperm.xlu0 %1613, %v704_v62  }
  0xb2   :  { %1294 = vperm.xlu1 %1614, %v1152_v63  }
  0xb3   :  { %855 = vperm.xlu0 %1613, %v705_v0  }
  0xb6   :  { %1299 = vperm.xlu1 %1614, %v1153_v1  }
  0xb7   :  { %860 = vperm.xlu0 %1613, %v706_v2   ;;  %v192_v2 = vpop.permute.xlu1 %191 }
  0xba   :  { %1304 = vperm.xlu1 %1614, %v1154_v3  }
  0xbb   :  { %865 = vperm.xlu0 %1613, %v707_v4  }
  0xbe   :  { %1314 = vperm.xlu1 %1614, %v1156_v5   ;;  %v187_v5 = vpop.permute.xlu0 %186 }
  0xbf   :  { %1309 = vperm.xlu0 %1613, %v1155_v6  }
  0xdc   :  { %v1477_v18 = vpop.f32.mrb[0].mxu0 }
  0xdd   :  { %v427_v20 = vadd.f32 %v1477_v18, %v102_v10  ;;  %v421_v21 = vpop.f32.mrb[1].mxu0  ;;  %v197_v18 = vpop.permute.xlu0 %196 }
  0xde   :  { %v422_v22 = vadd.f32 %v421_v21, %v97_v8 }
  0xdf   :  { %v581_v23 = vmax.f32 %v427_v20, 0.0 }
  0xe0   :  { %v580_v25 = vmax.f32 %v422_v22, 0.0  ;;  %v1480_v26 = vpop.f32.mrb[2].mxu0 }
  0xe1   :  { %v437_v27 = vadd.f32 %v1480_v26, %v112_v9  ;;  %v431_v28 = vpop.f32.mrb[3].mxu0 }
  0xe2   :  { %v1530_v30 = vpack.c.bf16 %v581_v23, %v580_v25  ;;  %v432_v31 = vadd.f32 %v431_v28, %v107_v7 }
  0xe3   :  { %v583_v33 = vmax.f32 %v437_v27, 0.0 }
  0xe4   :  { %v582_v34 = vmax.f32 %v432_v31, 0.0  ;;  %v1483_v35 = vpop.f32.mrb[4].mxu0  ;;  %1531 = vmatpush1.bf16.msra.mxu0 %v1530_v30  ;;  %1593 = vmatpush1.bf16.msra.mxu1 %v1530_v30  ;;  %v207_v31 = vpop.permute.xlu0 %206 }
  0xe5   :  { %v447_v36 = vadd.f32 %v1483_v35, %v122_v11  ;;  %v441_v37 = vpop.f32.mrb[5].mxu0  ;;  %1532 = vmatprep.subr.bf16.mxu0 %v1641_v24  ;;  %1578 = vmatprep.subr.bf16.mxu1 %v1641_v24 }
  0xe6   :  { %v1533_v38 = vpack.c.bf16 %v583_v33, %v582_v34  ;;  %v442_v39 = vadd.f32 %v441_v37, %v117_v12 }
  0xe7   :  { %v585_v40 = vmax.f32 %v447_v36, 0.0 }
  0xe8   :  { %v584_v42 = vmax.f32 %v442_v39, 0.0  ;;  %v1486_v43 = vpop.f32.mrb[6].mxu0  ;;  %1534 = vmatpush1.bf16.msra.mxu0 %v1533_v38  ;;  %1594 = vmatpush1.bf16.msra.mxu1 %v1533_v38 }
  0xe9   :  { %v457_v45 = vadd.f32 %v1486_v43, %v132_v13  ;;  %v451_v46 = vpop.f32.mrb[7].mxu0  ;;  %1535 = vmatprep.subr.bf16.mxu0 %v1641_v24  ;;  %1579 = vmatprep.subr.bf16.mxu1 %v1641_v24 }
  0xea   :  { %v1536_v47 = vpack.c.bf16 %v585_v40, %v584_v42  ;;  %v452_v48 = vadd.f32 %v451_v46, %v127_v14 }
  0xeb   :  { %v587_v49 = vmax.f32 %v457_v45, 0.0 }
  0xec   :  { %v586_v50 = vmax.f32 %v452_v48, 0.0  ;;  %v1489_v51 = vpop.f32.mrb[8].mxu0  ;;  %1537 = vmatpush1.bf16.msra.mxu0 %v1536_v47  ;;  %1595 = vmatpush1.bf16.msra.mxu1 %v1536_v47 }
  0xed   :  { %v467_v52 = vadd.f32 %v1489_v51, %v142_v15  ;;  %v461_v53 = vpop.f32.mrb[9].mxu0  ;;  %1538 = vmatprep.subr.bf16.mxu0 %v1641_v24  ;;  %1580 = vmatprep.subr.bf16.mxu1 %v1641_v24  ;;  %v202_v15 = vpop.permute.xlu1 %201 }
  0xee   :  { %v1539_v55 = vpack.c.bf16 %v587_v49, %v586_v50  ;;  %v462_v56 = vadd.f32 %v461_v53, %v137_v16 }
  0xef   :  { %v589_v58 = vmax.f32 %v467_v52, 0.0 }
  0xf0   :  { %v588_v59 = vmax.f32 %v462_v56, 0.0  ;;  %v1492_v60 = vpop.f32.mrb[10].mxu0  ;;  %1540 = vmatpush1.bf16.msra.mxu0 %v1539_v55  ;;  %1596 = vmatpush1.bf16.msra.mxu1 %v1539_v55 }
  0xf1   :  { %v477_v61 = vadd.f32 %v1492_v60, %v152_v17  ;;  %v471_v62 = vpop.f32.mrb[11].mxu0  ;;  %1541 = vmatprep.subr.bf16.mxu0 %v1641_v24  ;;  %1581 = vmatprep.subr.bf16.mxu1 %v1641_v24  ;;  %v212_v28 = vpop.permute.xlu1 %211 }
  0xf2   :  { %v1542_v63 = vpack.c.bf16 %v589_v58, %v588_v59  ;;  %v472_v0 = vadd.f32 %v471_v62, %v147_v19 }
  0xf3   :  { %v591_v1 = vmax.f32 %v477_v61, 0.0 }
  0xf4   :  { %v590_v3 = vmax.f32 %v472_v0, 0.0  ;;  %v1495_v4 = vpop.f32.mrb[12].mxu0  ;;  %1543 = vmatpush1.bf16.msra.mxu0 %v1542_v63  ;;  %1597 = vmatpush1.bf16.msra.mxu1 %v1542_v63 }
  0xf5   :  { %v487_v6 = vadd.f32 %v1495_v4, %v162_v29  ;;  %v481_v7 = vpop.f32.mrb[13].mxu0  ;;  %1544 = vmatprep.subr.bf16.mxu0 %v1641_v24  ;;  %1582 = vmatprep.subr.bf16.mxu1 %v1641_v24 }
  0xf6   :  { %v1545_v8 = vpack.c.bf16 %v591_v1, %v590_v3  ;;  %v482_v9 = vadd.f32 %v481_v7, %v157_v32 }
  0xf7   :  { %v593_v10 = vmax.f32 %v487_v6, 0.0 }
  0xf8   :  { %v592_v11 = vmax.f32 %v482_v9, 0.0  ;;  %v1498_v12 = vpop.f32.mrb[14].mxu0  ;;  %1546 = vmatpush1.bf16.msra.mxu0 %v1545_v8  ;;  %1598 = vmatpush1.bf16.msra.mxu1 %v1545_v8 }
  0xf9   :  { %v497_v13 = vadd.f32 %v1498_v12, %v172_v41  ;;  %v491_v14 = vpop.f32.mrb[15].mxu0  ;;  %1547 = vmatprep.subr.bf16.mxu0 %v1641_v24  ;;  %1583 = vmatprep.subr.bf16.mxu1 %v1641_v24  ;;  %v222_v41 = vpop.permute.xlu1 %221 }
  0xfa   :  { %v1548_v16 = vpack.c.bf16 %v593_v10, %v592_v11  ;;  %v492_v17 = vadd.f32 %v491_v14, %v167_v44  ;;  %v217_v44 = vpop.permute.xlu0 %216 }
  0xfb   :  { %v595_v19 = vmax.f32 %v497_v13, 0.0 }
  0xfc   :  { %v594_v20 = vmax.f32 %v492_v17, 0.0  ;;  %v1501_v21 = vpop.f32.mrb[16].mxu0  ;;  %1549 = vmatpush1.bf16.msra.mxu0 %v1548_v16  ;;  %1599 = vmatpush1.bf16.msra.mxu1 %v1548_v16 }
  0xfd   :  { %v507_v22 = vadd.f32 %v1501_v21, %v182_v54  ;;  %v501_v23 = vpop.f32.mrb[17].mxu0  ;;  %1550 = vmatprep.subr.bf16.mxu0 %v1641_v24  ;;  %1584 = vmatprep.subr.bf16.mxu1 %v1641_v24  ;;  %v232_v53 = vpop.permute.xlu1 %231 }
  0xfe   :  { %v1551_v25 = vpack.c.bf16 %v595_v19, %v594_v20  ;;  %v502_v26 = vadd.f32 %v501_v23, %v177_v57  ;;  %v227_v56 = vpop.permute.xlu0 %226 }
  0xff   :  { %v597_v27 = vmax.f32 %v507_v22, 0.0 }
 0x100   :  { %v596_v29 = vmax.f32 %v502_v26, 0.0  ;;  %v1504_v30 = vpop.f32.mrb[18].mxu0  ;;  %1552 = vmatpush1.bf16.msra.mxu0 %v1551_v25  ;;  %1600 = vmatpush1.bf16.msra.mxu1 %v1551_v25  ;;  %v612_v26 = vld [vmem:[%s2509_s3] sm:$0xff] }
 0x101   :  { %v517_v32 = vadd.f32 %v1504_v30, %v192_v2  ;;  %v511_v33 = vpop.f32.mrb[19].mxu0  ;;  %1553 = vmatprep.subr.bf16.mxu0 %v1641_v24  ;;  %1585 = vmatprep.subr.bf16.mxu1 %v1641_v24  ;;  %v242_v2 = vpop.permute.xlu1 %241  ;;  %v644_v30 = vld [vmem:[%s2509_s3 + $0x100] sm:$0xff] }
 0x102   :  { %v1554_v34 = vpack.c.bf16 %v597_v27, %v596_v29  ;;  %v512_v35 = vadd.f32 %v511_v33, %v187_v5  ;;  %v237_v5 = vpop.permute.xlu0 %236  ;;  %v642_v27 = vld [vmem:[%s2509_s3 + $0xf0] sm:$0xff]  ;;  %v645_v29 = vld [vmem:[%s2509_s3 + $0x108] sm:$0xff]  ;;  %v616_v33 = vld [vmem:[%s2509_s3 + $0x20] sm:$0xff] }
 0x103   :  { %v599_v36 = vmax.f32 %v517_v32, 0.0  ;;  %v647_v32 = vld [vmem:[%s2509_s3 + $0x118] sm:$0xff] }
 0x104   :  { %v598_v37 = vmax.f32 %v512_v35, 0.0  ;;  %v1507_v38 = vpop.f32.mrb[20].mxu0  ;;  %1555 = vmatpush1.bf16.msra.mxu0 %v1554_v34  ;;  %1601 = vmatpush1.bf16.msra.mxu1 %v1554_v34  ;;  %v646_v34 = vld [vmem:[%s2509_s3 + $0x110] sm:$0xff]  ;;  %v619_v35 = vld [vmem:[%s2509_s3 + $0x38] sm:$0xff] }
 0x105   :  { %v527_v39 = vadd.f32 %v1507_v38, %v202_v15  ;;  %v521_v40 = vpop.f32.mrb[21].mxu0  ;;  %1556 = vmatprep.subr.bf16.mxu0 %v1641_v24  ;;  %1586 = vmatprep.subr.bf16.mxu1 %v1641_v24  ;;  %v252_v14 = vpop.permute.xlu1 %251  ;;  %v648_v38 = vld [vmem:[%s2509_s3 + $0x120] sm:$0xff] }
 0x106   :  { %v1557_v42 = vpack.c.bf16 %v599_v36, %v598_v37  ;;  %v522_v43 = vadd.f32 %v521_v40, %v197_v18  ;;  %v247_v17 = vpop.permute.xlu0 %246  ;;  %v649_v36 = vld [vmem:[%s2509_s3 + $0x128] sm:$0xff]  ;;  %v618_v37 = vld [vmem:[%s2509_s3 + $0x30] sm:$0xff]  ;;  %v651_v40 = vld [vmem:[%s2509_s3 + $0x138] sm:$0xff] }
 0x107   :  { %v601_v45 = vmax.f32 %v527_v39, 0.0  ;;  %v621_v39 = vld [vmem:[%s2509_s3 + $0x48] sm:$0xff] }
 0x108   :  { %v600_v46 = vmax.f32 %v522_v43, 0.0  ;;  %v1510_v47 = vpop.f32.mrb[22].mxu0  ;;  %1558 = vmatpush1.bf16.msra.mxu0 %v1557_v42  ;;  %1602 = vmatpush1.bf16.msra.mxu1 %v1557_v42  ;;  %v650_v42 = vld [vmem:[%s2509_s3 + $0x130] sm:$0xff]  ;;  %v623_v43 = vld [vmem:[%s2509_s3 + $0x58] sm:$0xff] }
 0x109   :  { %v537_v48 = vadd.f32 %v1510_v47, %v212_v28  ;;  %v531_v49 = vpop.f32.mrb[23].mxu0  ;;  %1559 = vmatprep.subr.bf16.mxu0 %v1641_v24  ;;  %1587 = vmatprep.subr.bf16.mxu1 %v1641_v24  ;;  %v615_v28 = vld [vmem:[%s2509_s3 + $0x18] sm:$0xff]  ;;  %v625_v47 = vld [vmem:[%s2509_s3 + $0x68] sm:$0xff] }
 0x10a   :  { %v1560_v50 = vpack.c.bf16 %v601_v45, %v600_v46  ;;  %v532_v51 = vadd.f32 %v531_v49, %v207_v31  ;;  %v617_v31 = vld [vmem:[%s2509_s3 + $0x28] sm:$0xff]  ;;  %v622_v45 = vld [vmem:[%s2509_s3 + $0x50] sm:$0xff]  ;;  %v652_v46 = vld [vmem:[%s2509_s3 + $0x140] sm:$0xff] }
 0x10b   :  { %v603_v52 = vmax.f32 %v537_v48, 0.0  ;;  %v655_v48 = vld [vmem:[%s2509_s3 + $0x158] sm:$0xff]  ;;  %v624_v49 = vld [vmem:[%s2509_s3 + $0x60] sm:$0xff] }
 0x10c   :  { %v602_v54 = vmax.f32 %v532_v51, 0.0  ;;  %v1513_v55 = vpop.f32.mrb[24].mxu0  ;;  %1561 = vmatpush1.bf16.msra.mxu0 %v1560_v50  ;;  %1603 = vmatpush1.bf16.msra.mxu1 %v1560_v50  ;;  %v654_v50 = vld [vmem:[%s2509_s3 + $0x150] sm:$0xff]  ;;  %v627_v51 = vld [vmem:[%s2509_s3 + $0x78] sm:$0xff] }
 0x10d   :  { %v547_v57 = vadd.f32 %v1513_v55, %v222_v41  ;;  %v541_v58 = vpop.f32.mrb[25].mxu0  ;;  %1562 = vmatprep.subr.bf16.mxu0 %v1641_v24  ;;  %1588 = vmatprep.subr.bf16.mxu1 %v1641_v24  ;;  %v620_v41 = vld [vmem:[%s2509_s3 + $0x40] sm:$0xff]  ;;  %v629_v55 = vld [vmem:[%s2509_s3 + $0x88] sm:$0xff] }
 0x10e   :  { %v1563_v59 = vpack.c.bf16 %v603_v52, %v602_v54  ;;  %v542_v60 = vadd.f32 %v541_v58, %v217_v44  ;;  %v653_v44 = vld [vmem:[%s2509_s3 + $0x148] sm:$0xff]  ;;  %v656_v54 = vld [vmem:[%s2509_s3 + $0x160] sm:$0xff]  ;;  %v658_v58 = vld [vmem:[%s2509_s3 + $0x170] sm:$0xff] }
 0x10f   :  { %v605_v61 = vmax.f32 %v547_v57, 0.0  ;;  %v657_v52 = vld [vmem:[%s2509_s3 + $0x168] sm:$0xff]  ;;  %v628_v57 = vld [vmem:[%s2509_s3 + $0x80] sm:$0xff] }
 0x110   :  { %v604_v62 = vmax.f32 %v542_v60, 0.0  ;;  %v1516_v63 = vpop.f32.mrb[26].mxu0  ;;  %1564 = vmatpush1.bf16.msra.mxu0 %v1563_v59  ;;  %1604 = vmatpush1.bf16.msra.mxu1 %v1563_v59  ;;  %v631_v59 = vld [vmem:[%s2509_s3 + $0x98] sm:$0xff]  ;;  %v661_v60 = vld [vmem:[%s2509_s3 + $0x188] sm:$0xff] }
 0x111   :  { %v557_v0 = vadd.f32 %v1516_v63, %v232_v53  ;;  %v551_v1 = vpop.f32.mrb[27].mxu0  ;;  %1565 = vmatprep.subr.bf16.mxu0 %v1641_v24  ;;  %1589 = vmatprep.subr.bf16.mxu1 %v1641_v24  ;;  %v626_v53 = vld [vmem:[%s2509_s3 + $0x70] sm:$0xff]  ;;  %v633_v63 = vld [vmem:[%s2509_s3 + $0xa8] sm:$0xff] }
 0x112   :  { %v1566_v3 = vpack.c.bf16 %v605_v61, %v604_v62  ;;  %v552_v4 = vadd.f32 %v551_v1, %v227_v56  ;;  %v659_v56 = vld [vmem:[%s2509_s3 + $0x178] sm:$0xff]  ;;  %v630_v61 = vld [vmem:[%s2509_s3 + $0x90] sm:$0xff]  ;;  %v660_v62 = vld [vmem:[%s2509_s3 + $0x180] sm:$0xff] }
 0x113   :  { %v607_v6 = vmax.f32 %v557_v0, 0.0  ;;  %v663_v0 = vld [vmem:[%s2509_s3 + $0x198] sm:$0xff]  ;;  %v632_v1 = vld [vmem:[%s2509_s3 + $0xa0] sm:$0xff] }
 0x114   :  { %v606_v7 = vmax.f32 %v552_v4, 0.0  ;;  %v1519_v8 = vpop.f32.mrb[28].mxu0  ;;  %1567 = vmatpush1.bf16.msra.mxu0 %v1566_v3  ;;  %1605 = vmatpush1.bf16.msra.mxu1 %v1566_v3  ;;  %v635_v3 = vld [vmem:[%s2509_s3 + $0xb8] sm:$0xff]  ;;  %v665_v4 = vld [vmem:[%s2509_s3 + $0x1a8] sm:$0xff] }
 0x115   :  { %v567_v9 = vadd.f32 %v1519_v8, %v242_v2  ;;  %v561_v10 = vpop.f32.mrb[29].mxu0  ;;  %1568 = vmatprep.subr.bf16.mxu0 %v1641_v24  ;;  %1590 = vmatprep.subr.bf16.mxu1 %v1641_v24  ;;  %v662_v2 = vld [vmem:[%s2509_s3 + $0x190] sm:$0xff]  ;;  %v667_v8 = vld [vmem:[%s2509_s3 + $0x1b8] sm:$0xff] }
 0x116   :  { %v1569_v11 = vpack.c.bf16 %v607_v6, %v606_v7  ;;  %v562_v12 = vadd.f32 %v561_v10, %v237_v5  ;;  %v634_v5 = vld [vmem:[%s2509_s3 + $0xb0] sm:$0xff]  ;;  %v664_v6 = vld [vmem:[%s2509_s3 + $0x1a0] sm:$0xff]  ;;  %v637_v7 = vld [vmem:[%s2509_s3 + $0xc8] sm:$0xff] }
 0x117   :  { %v609_v13 = vmax.f32 %v567_v9, 0.0  ;;  %v636_v9 = vld [vmem:[%s2509_s3 + $0xc0] sm:$0xff]  ;;  %v666_v10 = vld [vmem:[%s2509_s3 + $0x1b0] sm:$0xff] }
 0x118   :  { %v608_v15 = vmax.f32 %v562_v12, 0.0  ;;  %v1522_v16 = vpop.f32.mrb[30].mxu0  ;;  %1570 = vmatpush1.bf16.msra.mxu0 %v1569_v11  ;;  %1606 = vmatpush1.bf16.msra.mxu1 %v1569_v11  ;;  %v639_v11 = vld [vmem:[%s2509_s3 + $0xd8] sm:$0xff]  ;;  %v669_v12 = vld [vmem:[%s2509_s3 + $0x1c8] sm:$0xff] }
 0x119   :  { %v577_v18 = vadd.f32 %v1522_v16, %v252_v14  ;;  %v571_v19 = vpop.f32.mrb[31].mxu0  ;;  %1571 = vmatprep.subr.bf16.mxu0 %v1641_v24  ;;  %1591 = vmatprep.subr.bf16.mxu1 %v1641_v24  ;;  %v668_v14 = vld [vmem:[%s2509_s3 + $0x1c0] sm:$0xff]  ;;  %v671_v16 = vld [vmem:[%s2509_s3 + $0x1d8] sm:$0xff] }
 0x11a   :  { %v1572_v20 = vpack.c.bf16 %v609_v13, %v608_v15  ;;  %v572_v21 = vadd.f32 %v571_v19, %v247_v17  ;;  %v638_v13 = vld [vmem:[%s2509_s3 + $0xd0] sm:$0xff]  ;;  %v641_v15 = vld [vmem:[%s2509_s3 + $0xe8] sm:$0xff]  ;;  %v640_v17 = vld [vmem:[%s2509_s3 + $0xe0] sm:$0xff] }
 0x11b   :  { %v611_v22 = vmax.f32 %v577_v18, 0.0  ;;  %v670_v18 = vld [vmem:[%s2509_s3 + $0x1d0] sm:$0xff]  ;;  %v673_v19 = vld [vmem:[%s2509_s3 + $0x1e8] sm:$0xff] }
 0x11c   :  { %v610_v23 = vmax.f32 %v572_v21, 0.0  ;;  %1573 = vmatpush1.bf16.msra.mxu0 %v1572_v20  ;;  %1607 = vmatpush1.bf16.msra.mxu1 %v1572_v20  ;;  %v672_v20 = vld [vmem:[%s2509_s3 + $0x1e0] sm:$0xff]  ;;  %v675_v21 = vld [vmem:[%s2509_s3 + $0x1f8] sm:$0xff] }
 0x11d   :  { %1574 = vmatprep.subr.bf16.mxu0 %v1641_v24  ;;  %1592 = vmatprep.subr.bf16.mxu1 %v1641_v24  ;;  %v614_v24 = vld [vmem:[%s2509_s3 + $0x10] sm:$0xff] }
 0x11e   :  { %v1575_v25 = vpack.c.bf16 %v611_v22, %v610_v23  ;;  %v674_v22 = vld [vmem:[%s2509_s3 + $0x1f0] sm:$0xff]  ;;  %v711_v23 = vpop.permute.xlu0 %710 }
 0x120   :  { %1576 = vmatpush1.bf16.msra.mxu0 %v1575_v25  ;;  %1608 = vmatpush1.bf16.msra.mxu1 %v1575_v25  ;;  %v716_v25 = vpop.permute.xlu1 %715 }
 0x123   :  { %933 = vmatmul.mubr.f32.vlgmr.msra.gmra.mrb[32].mxu0 %v612_v26  ;;  %1008 = vmatmul.mubr.f32.vlgmr.msra.gmra.mrb[0].mxu1 %v642_v27  ;;  %v721_v26 = vpop.permute.xlu0 %720 }
 0x124   :  { %937 = vmatprep.mubr.f32.mxu0 %v615_v28  ;;  %1012 = vmatprep.mubr.f32.mxu1 %v645_v29  ;;  %v726_v27 = vpop.permute.xlu1 %725 }
 0x127   :  { %938 = vmatmul.mubr.f32.gmra.mrb[34].mxu0 %v614_v24  ;;  %1013 = vmatmul.mubr.f32.gmra.mrb[2].mxu1 %v644_v30  ;;  %v2329_v28 = vpop.permute.xlu0 %730 }
 0x128   :  { %942 = vmatprep.mubr.f32.mxu0 %v617_v31  ;;  %1017 = vmatprep.mubr.f32.mxu1 %v647_v32  ;;  %v2331_v29 = vpop.permute.xlu1 %735 }
 0x12b   :  { %943 = vmatmul.mubr.f32.gmra.mrb[36].mxu0 %v616_v33  ;;  %1018 = vmatmul.mubr.f32.gmra.mrb[4].mxu1 %v646_v34  ;;  %v2333_v24 = vpop.permute.xlu0 %740 }
 0x12c   :  { %947 = vmatprep.mubr.f32.mxu0 %v619_v35  ;;  %1022 = vmatprep.mubr.f32.mxu1 %v649_v36  ;;  %v2335_v30 = vpop.permute.xlu1 %745 }
 0x12f   :  { %948 = vmatmul.mubr.f32.gmra.mrb[38].mxu0 %v618_v37  ;;  %1023 = vmatmul.mubr.f32.gmra.mrb[6].mxu1 %v648_v38  ;;  %v2337_v31 = vpop.permute.xlu0 %750 }
 0x130   :  { %952 = vmatprep.mubr.f32.mxu0 %v621_v39  ;;  %1027 = vmatprep.mubr.f32.mxu1 %v651_v40  ;;  %v2339_v32 = vpop.permute.xlu1 %755 }
 0x133   :  { %953 = vmatmul.mubr.f32.gmra.mrb[40].mxu0 %v620_v41  ;;  %1028 = vmatmul.mubr.f32.gmra.mrb[8].mxu1 %v650_v42  ;;  %v2341_v33 = vpop.permute.xlu0 %760 }
 0x134   :  { %957 = vmatprep.mubr.f32.mxu0 %v623_v43  ;;  %1032 = vmatprep.mubr.f32.mxu1 %v653_v44  ;;  %v2343_v34 = vpop.permute.xlu1 %765 }
 0x137   :  { %958 = vmatmul.mubr.f32.gmra.mrb[42].mxu0 %v622_v45  ;;  %1033 = vmatmul.mubr.f32.gmra.mrb[10].mxu1 %v652_v46  ;;  %v2345_v35 = vpop.permute.xlu0 %770 }
 0x138   :  { %962 = vmatprep.mubr.f32.mxu0 %v625_v47  ;;  %1037 = vmatprep.mubr.f32.mxu1 %v655_v48  ;;  %v2347_v36 = vpop.permute.xlu1 %775 }
 0x13b   :  { %963 = vmatmul.mubr.f32.gmra.mrb[44].mxu0 %v624_v49  ;;  %1038 = vmatmul.mubr.f32.gmra.mrb[12].mxu1 %v654_v50  ;;  %v2349_v37 = vpop.permute.xlu0 %780 }
 0x13c   :  { %967 = vmatprep.mubr.f32.mxu0 %v627_v51  ;;  %1042 = vmatprep.mubr.f32.mxu1 %v657_v52  ;;  %v2351_v38 = vpop.permute.xlu1 %785 }
 0x13f   :  { %968 = vmatmul.mubr.f32.gmra.mrb[46].mxu0 %v626_v53  ;;  %1043 = vmatmul.mubr.f32.gmra.mrb[14].mxu1 %v656_v54  ;;  %v2353_v39 = vpop.permute.xlu0 %790 }
 0x140   :  { %972 = vmatprep.mubr.f32.mxu0 %v629_v55  ;;  %1047 = vmatprep.mubr.f32.mxu1 %v659_v56  ;;  %v2355_v40 = vpop.permute.xlu1 %795 }
 0x143   :  { %973 = vmatmul.mubr.f32.gmra.mrb[48].mxu0 %v628_v57  ;;  %1048 = vmatmul.mubr.f32.gmra.mrb[16].mxu1 %v658_v58  ;;  %v2357_v41 = vpop.permute.xlu0 %800 }
 0x144   :  { %977 = vmatprep.mubr.f32.mxu0 %v631_v59  ;;  %1052 = vmatprep.mubr.f32.mxu1 %v661_v60  ;;  %v2359_v42 = vpop.permute.xlu1 %805 }
 0x147   :  { %978 = vmatmul.mubr.f32.gmra.mrb[50].mxu0 %v630_v61  ;;  %1053 = vmatmul.mubr.f32.gmra.mrb[18].mxu1 %v660_v62  ;;  %v2361_v43 = vpop.permute.xlu0 %810 }
 0x148   :  { %982 = vmatprep.mubr.f32.mxu0 %v633_v63  ;;  %1057 = vmatprep.mubr.f32.mxu1 %v663_v0  ;;  %v2363_v44 = vpop.permute.xlu1 %815 }
 0x14b   :  { %983 = vmatmul.mubr.f32.gmra.mrb[52].mxu0 %v632_v1  ;;  %1058 = vmatmul.mubr.f32.gmra.mrb[20].mxu1 %v662_v2  ;;  %v2365_v45 = vpop.permute.xlu0 %820 }
 0x14c   :  { %987 = vmatprep.mubr.f32.mxu0 %v635_v3  ;;  %1062 = vmatprep.mubr.f32.mxu1 %v665_v4  ;;  %v2367_v46 = vpop.permute.xlu1 %825 }
 0x14f   :  { %988 = vmatmul.mubr.f32.gmra.mrb[54].mxu0 %v634_v5  ;;  %1063 = vmatmul.mubr.f32.gmra.mrb[22].mxu1 %v664_v6  ;;  %v2369_v47 = vpop.permute.xlu0 %830 }
 0x150   :  { %992 = vmatprep.mubr.f32.mxu0 %v637_v7  ;;  %1067 = vmatprep.mubr.f32.mxu1 %v667_v8  ;;  %v2371_v48 = vpop.permute.xlu1 %835 }
 0x153   :  { %993 = vmatmul.mubr.f32.gmra.mrb[56].mxu0 %v636_v9  ;;  %1068 = vmatmul.mubr.f32.gmra.mrb[24].mxu1 %v666_v10  ;;  %v2373_v49 = vpop.permute.xlu0 %840 }
 0x154   :  { %997 = vmatprep.mubr.f32.mxu0 %v639_v11  ;;  %1072 = vmatprep.mubr.f32.mxu1 %v669_v12  ;;  %v2375_v50 = vpop.permute.xlu1 %845 }
 0x157   :  { %998 = vmatmul.mubr.f32.gmra.mrb[58].mxu0 %v638_v13  ;;  %1073 = vmatmul.mubr.f32.gmra.mrb[26].mxu1 %v668_v14  ;;  %v1160_v51 = vpop.permute.xlu0 %1159 }
 0x158   :  { %1002 = vmatprep.mubr.f32.mxu0 %v641_v15  ;;  %1077 = vmatprep.mubr.f32.mxu1 %v671_v16  ;;  %v1165_v52 = vpop.permute.xlu1 %1164 }
 0x15b   :  { %1003 = vmatmul.mubr.f32.gmra.mrb[60].mxu0 %v640_v17  ;;  %1078 = vmatmul.mubr.f32.gmra.mrb[28].mxu1 %v670_v18  ;;  %v1170_v53 = vpop.permute.xlu0 %1169 }
 0x15c   :  { %1082 = vmatprep.mubr.f32.mxu1 %v673_v19  ;;  %v1175_v54 = vpop.permute.xlu1 %1174 }
 0x15f   :  { %1083 = vmatmul.mubr.f32.gmra.mrb[30].mxu1 %v672_v20  ;;  %v1180_v55 = vpop.permute.xlu0 %1179 }
 0x160   :  { %1087 = vmatprep.mubr.f32.mxu1 %v675_v21  ;;  %v1185_v56 = vpop.permute.xlu1 %1184 }
 0x163   :  { %1088 = vmatmul.mubr.f32.gmra.mrb[32].mxu1 %v674_v22  ;;  %v2377_v57 = vpop.permute.xlu0 %1189 }
 0x164   :  { %v2379_v58 = vpop.permute.xlu1 %1194 }
 0x167   :  { %v2381_v59 = vpop.permute.xlu0 %1199 }
 0x168   :  { %v2385_v1 = vpop.permute.xlu1 %1204 }
 0x16b   :  { %v2389_v8 = vpop.permute.xlu0 %1209 }
 0x16c   :  { %v2393_v17 = vpop.permute.xlu1 %1214 }
 0x1f6   :  { %v934_v60 = vpop.f32.mrb[32].mxu0  ;;  %v2383_v61 = vpop.f32.mrb[0].mxu1 }
 0x1f7   :  { %v935_v62 = vadd.f32 %v934_v60, %v711_v23  ;;  %v936_v63 = vpop.f32.mrb[33].mxu0  ;;  %v1011_v0 = vpop.f32.mrb[1].mxu1 }
 0x1f9   :  { %v1093_v4 = vmax.f32 %v935_v62, 0.0  ;;  %v2397_v62 = vpop.permute.xlu0 %1219 }
 0x1fa   :  { %v939_v2 = vpop.f32.mrb[34].mxu0  ;;  %v2387_v3 = vpop.f32.mrb[2].mxu1 }
 0x1fb   :  { %v940_v5 = vadd.f32 %v939_v2, %v716_v25  ;;  %v941_v6 = vpop.f32.mrb[35].mxu0  ;;  %v1016_v7 = vpop.f32.mrb[3].mxu1  ;;  %v1317_v12 = vmul.f32 %v1160_v51, %v1093_v4 }
 0x1fc   :  { %v2402_v6 = vpop.permute.xlu1 %1224 }
 0x1fd   :  { %v1094_v9 = vmax.f32 %v940_v5, 0.0 }
 0x1fe   :  { %v944_v10 = vpop.f32.mrb[36].mxu0  ;;  %v2391_v11 = vpop.f32.mrb[4].mxu1 }
 0x1ff   :  { %v1318_v13 = vmul.f32 %v1165_v52, %v1094_v9  ;;  %v945_v14 = vadd.f32 %v944_v10, %v721_v26  ;;  %v946_v15 = vpop.f32.mrb[37].mxu0  ;;  %v1021_v16 = vpop.f32.mrb[5].mxu1 }
 0x200   :  { %v2407_v15 = vpop.permute.xlu0 %1229 }
 0x201   :  { %v1349_v18 = vadd.f32 %v1318_v13, %v1317_v12  ;;  %v1095_v19 = vmax.f32 %v945_v14, 0.0 }
 0x202   :  { %v949_v20 = vpop.f32.mrb[38].mxu0  ;;  %v2395_v21 = vpop.f32.mrb[6].mxu1 }
 0x203   :  { %v1319_v22 = vmul.f32 %v1170_v53, %v1095_v19  ;;  %v950_v23 = vadd.f32 %v949_v20, %v726_v27  ;;  %v951_v25 = vpop.f32.mrb[39].mxu0  ;;  %v1026_v60 = vpop.f32.mrb[7].mxu1 }
 0x204   :  { %v2412_v25 = vpop.permute.xlu1 %1234 }
 0x205   :  { %v1350_v63 = vadd.f32 %v1349_v18, %v1319_v22  ;;  %v1096_v0 = vmax.f32 %v950_v23, 0.0 }
 0x206   :  { %v954_v51 = vpop.f32.mrb[40].mxu0  ;;  %v2399_v52 = vpop.f32.mrb[8].mxu1 }
 0x207   :  { %v1320_v26 = vmul.f32 %v1175_v54, %v1096_v0  ;;  %v955_v2 = vadd.f32 %v954_v51, %v2329_v28  ;;  %v956_v4 = vpop.f32.mrb[41].mxu0  ;;  %v1031_v5 = vpop.f32.mrb[9].mxu1 }
 0x208   :  { %v2418_v4 = vpop.permute.xlu0 %1239 }
 0x209   :  { %v1351_v7 = vadd.f32 %v1350_v63, %v1320_v26  ;;  %v1097_v9 = vmax.f32 %v955_v2, 0.0 }
 0x20a   :  { %v959_v53 = vpop.f32.mrb[42].mxu0  ;;  %v2404_v27 = vpop.f32.mrb[10].mxu1 }
 0x20b   :  { %v1321_v10 = vmul.f32 %v1180_v55, %v1097_v9  ;;  %v960_v12 = vadd.f32 %v959_v53, %v2331_v29  ;;  %v961_v13 = vpop.f32.mrb[43].mxu0  ;;  %v1036_v14 = vpop.f32.mrb[11].mxu1 }
 0x20c   :  { %v2424_v13 = vpop.permute.xlu1 %1244 }
 0x20d   :  { %v1352_v16 = vadd.f32 %v1351_v7, %v1321_v10  ;;  %v1098_v54 = vmax.f32 %v960_v12, 0.0 }
 0x20e   :  { %v964_v18 = vpop.f32.mrb[44].mxu0  ;;  %v2409_v28 = vpop.f32.mrb[12].mxu1 }
 0x20f   :  { %v1322_v19 = vmul.f32 %v1185_v56, %v1098_v54  ;;  %v965_v20 = vadd.f32 %v964_v18, %v2333_v24  ;;  %v966_v22 = vpop.f32.mrb[45].mxu0  ;;  %v1041_v23 = vpop.f32.mrb[13].mxu1 }
 0x210   :  { %v2430_v22 = vpop.permute.xlu0 %1249 }
 0x211   :  { %v1353_v60 = vadd.f32 %v1352_v16, %v1322_v19  ;;  %v1099_v55 = vmax.f32 %v965_v20, 0.0 }
 0x212   :  { %v969_v63 = vpop.f32.mrb[46].mxu0  ;;  %v2414_v29 = vpop.f32.mrb[14].mxu1 }
 0x213   :  { %v1323_v0 = vmul.f32 %v2377_v57, %v1099_v55  ;;  %v970_v51 = vadd.f32 %v969_v63, %v2335_v30  ;;  %v971_v26 = vpop.f32.mrb[47].mxu0  ;;  %v1046_v2 = vpop.f32.mrb[15].mxu1 }
 0x214   :  { %v2436_v26 = vpop.permute.xlu1 %1254 }
 0x215   :  { %v1354_v56 = vadd.f32 %v1353_v60, %v1323_v0  ;;  %v1100_v5 = vmax.f32 %v970_v51, 0.0 }
 0x216   :  { %v974_v24 = vpop.f32.mrb[48].mxu0  ;;  %v2420_v7 = vpop.f32.mrb[16].mxu1 }
 0x217   :  { %v1324_v9 = vmul.f32 %v2379_v58, %v1100_v5  ;;  %v975_v53 = vadd.f32 %v974_v24, %v2337_v31  ;;  %v976_v10 = vpop.f32.mrb[49].mxu0  ;;  %v1051_v12 = vpop.f32.mrb[17].mxu1 }
 0x218   :  { %v2442_v10 = vpop.permute.xlu0 %1259 }
 0x219   :  { %v1355_v57 = vadd.f32 %v1354_v56, %v1324_v9  ;;  %v1101_v14 = vmax.f32 %v975_v53, 0.0 }
 0x21a   :  { %v979_v30 = vpop.f32.mrb[50].mxu0  ;;  %v2426_v16 = vpop.f32.mrb[18].mxu1 }
 0x21b   :  { %v1325_v54 = vmul.f32 %v2381_v59, %v1101_v14  ;;  %v980_v18 = vadd.f32 %v979_v30, %v2339_v32  ;;  %v981_v19 = vpop.f32.mrb[51].mxu0  ;;  %v1056_v20 = vpop.f32.mrb[19].mxu1 }
 0x21c   :  { %v1265_v19 = vpop.permute.xlu1 %1264 }
 0x21d   :  { %v1356_v58 = vadd.f32 %v1355_v57, %v1325_v54  ;;  %v1102_v23 = vmax.f32 %v980_v18, 0.0 }
 0x21e   :  { %v984_v31 = vpop.f32.mrb[52].mxu0  ;;  %v2432_v60 = vpop.f32.mrb[20].mxu1 }
 0x21f   :  { %v1326_v55 = vmul.f32 %v2385_v1, %v1102_v23  ;;  %v985_v63 = vadd.f32 %v984_v31, %v2341_v33  ;;  %v986_v0 = vpop.f32.mrb[53].mxu0  ;;  %v1061_v51 = vpop.f32.mrb[21].mxu1 }
 0x220   :  { %v1270_v0 = vpop.permute.xlu0 %1269 }
 0x221   :  { %v1357_v59 = vadd.f32 %v1356_v58, %v1326_v55  ;;  %v1103_v2 = vmax.f32 %v985_v63, 0.0 }
 0x222   :  { %v989_v32 = vpop.f32.mrb[54].mxu0  ;;  %v2438_v56 = vpop.f32.mrb[22].mxu1 }
 0x223   :  { %v1327_v5 = vmul.f32 %v2389_v8, %v1103_v2  ;;  %v990_v24 = vadd.f32 %v989_v32, %v2343_v34  ;;  %v991_v9 = vpop.f32.mrb[55].mxu0  ;;  %v1066_v53 = vpop.f32.mrb[23].mxu1  ;;  %v1015_v32 = vadd.f32 %v2387_v3, %v2353_v39 }
 0x224   :  { %v1275_v9 = vpop.permute.xlu1 %1274 }
 0x225   :  { %v1358_v1 = vadd.f32 %v1357_v59, %v1327_v5  ;;  %v1104_v12 = vmax.f32 %v990_v24, 0.0 }
 0x226   :  { %v994_v33 = vpop.f32.mrb[56].mxu0  ;;  %v2444_v57 = vpop.f32.mrb[24].mxu1 }
 0x227   :  { %v1328_v14 = vmul.f32 %v2393_v17, %v1104_v12  ;;  %v995_v30 = vadd.f32 %v994_v33, %v2345_v35  ;;  %v996_v54 = vpop.f32.mrb[57].mxu0  ;;  %v1071_v18 = vpop.f32.mrb[25].mxu1  ;;  %v1010_v17 = vadd.f32 %v2383_v61, %v2351_v38  ;;  %v1109_v33 = vmax.f32 %v1015_v32, 0.0 }
 0x228   :  { %v1030_v54 = vadd.f32 %v2399_v52, %v2359_v42 }
 0x229   :  { %v1359_v20 = vadd.f32 %v1358_v1, %v1328_v14  ;;  %v1105_v8 = vmax.f32 %v995_v30, 0.0  ;;  %v1108_v53 = vmax.f32 %v1010_v17, 0.0  ;;  %v1020_v1 = vadd.f32 %v2391_v11, %v2355_v40 }
 0x22a   :  { %v999_v58 = vpop.f32.mrb[58].mxu0  ;;  %v2448_v34 = vpop.f32.mrb[26].mxu1  ;;  %v1025_v14 = vadd.f32 %v2395_v21, %v2357_v41  ;;  %v1333_v11 = vmul.f32 %v2418_v4, %v1109_v33  ;;  %v1045_v4 = vadd.f32 %v2414_v29, %v2365_v45  ;;  %v1060_v45 = vadd.f32 %v2432_v60, %v2371_v48 }
 0x22b   :  { %v1329_v23 = vmul.f32 %v2397_v62, %v1105_v8  ;;  %v1000_v31 = vadd.f32 %v999_v58, %v2347_v36  ;;  %v1001_v55 = vpop.f32.mrb[59].mxu0  ;;  %v1076_v63 = vpop.f32.mrb[27].mxu1  ;;  %v1110_v30 = vmax.f32 %v1020_v1, 0.0  ;;  %v1035_v58 = vadd.f32 %v2404_v27, %v2361_v43 }
 0x22c   :  { %v1111_v8 = vmax.f32 %v1025_v14, 0.0 }
 0x22d   :  { %v1360_v51 = vadd.f32 %v1359_v20, %v1329_v23  ;;  %v1106_v35 = vmax.f32 %v1000_v31, 0.0  ;;  %v1285_v20 = vpop.permute.xlu1 %1284  ;;  %v1112_v23 = vmax.f32 %v1030_v54, 0.0  ;;  %v1113_v52 = vmax.f32 %v1035_v58, 0.0 }
 0x22e   :  { %v1004_v59 = vpop.f32.mrb[60].mxu0  ;;  %v2454_v2 = vpop.f32.mrb[28].mxu1  ;;  %v1335_v42 = vmul.f32 %v2430_v22, %v1111_v8 }
 0x22f   :  { %v1330_v5 = vmul.f32 %v2402_v6, %v1106_v35  ;;  %v1005_v62 = vadd.f32 %v1004_v59, %v2349_v37  ;;  %v1006_v24 = vpop.f32.mrb[61].mxu0  ;;  %v1081_v36 = vpop.f32.mrb[29].mxu1  ;;  %v1332_v37 = vmul.f32 %v2412_v25, %v1108_v53  ;;  %v1040_v25 = vadd.f32 %v2409_v28, %v2363_v44 }
 0x230   :  { %v1280_v6 = vpop.permute.xlu0 %1279  ;;  %v1336_v43 = vmul.f32 %v2436_v26, %v1112_v23  ;;  %v1337_v35 = vmul.f32 %v2442_v10, %v1113_v52  ;;  %v1115_v44 = vmax.f32 %v1045_v4, 0.0  ;;  %v1055_v28 = vadd.f32 %v2426_v16, %v2369_v47 }
 0x231   :  { %v1361_v38 = vadd.f32 %v1360_v51, %v1330_v5  ;;  %v1107_v61 = vmax.f32 %v1005_v62, 0.0  ;;  %v1290_v17 = vpop.permute.xlu1 %1289  ;;  %v1114_v27 = vmax.f32 %v1040_v25, 0.0  ;;  %v1118_v36 = vmax.f32 %v1060_v45, 0.0 }
 0x232   :  { %v1084_v12 = vpop.f32.mrb[30].mxu1  ;;  %v1339_v62 = vmul.f32 %v1270_v0, %v1115_v44  ;;  %v1117_v24 = vmax.f32 %v1055_v28, 0.0  ;;  %v1070_v47 = vadd.f32 %v2444_v57, %v2375_v50 }
 0x233   :  { %v1331_v39 = vmul.f32 %v2407_v15, %v1107_v61  ;;  %v1086_v3 = vpop.f32.mrb[31].mxu1  ;;  %v1334_v15 = vmul.f32 %v2424_v13, %v1110_v30  ;;  %v1050_v13 = vadd.f32 %v2420_v7, %v2367_v46  ;;  %v1338_v32 = vmul.f32 %v1265_v19, %v1114_v27 }
 0x234   :  { %v851_v55 = vpop.permute.xlu0 %850  ;;  %v1065_v46 = vadd.f32 %v2438_v56, %v2373_v49  ;;  %v1341_v19 = vmul.f32 %v1280_v6, %v1117_v24  ;;  %v1342_v61 = vmul.f32 %v1285_v20, %v1118_v36  ;;  %v1120_v0 = vmax.f32 %v1070_v47, 0.0 }
 0x235   :  { %v1362_v18 = vadd.f32 %v1361_v38, %v1331_v39  ;;  %v1116_v5 = vmax.f32 %v1050_v13, 0.0  ;;  %v1295_v26 = vpop.permute.xlu1 %1294  ;;  %v1075_v38 = vadd.f32 %v2448_v34, %v851_v55 }
 0x236   :  { %v1089_v40 = vpop.f32.mrb[32].mxu1  ;;  %v1119_v1 = vmax.f32 %v1065_v46, 0.0 }
 0x237   :  { %v1363_v41 = vadd.f32 %v1362_v18, %v1332_v37  ;;  %v1091_v21 = vpop.f32.mrb[33].mxu1  ;;  %v1340_v10 = vmul.f32 %v1275_v9, %v1116_v5  ;;  %v1121_v56 = vmax.f32 %v1075_v38, 0.0  ;;  %v1344_v37 = vmul.f32 %v1295_v26, %v1120_v0 }
 0x238   :  { %v856_v59 = vpop.permute.xlu0 %855  ;;  %v1343_v49 = vmul.f32 %v1290_v17, %v1119_v1 }
 0x239   :  { %v1364_v31 = vadd.f32 %v1363_v41, %v1333_v11  ;;  %v1300_v60 = vpop.permute.xlu1 %1299  ;;  %v1080_v33 = vadd.f32 %v2454_v2, %v856_v59 }
 0x23a   :  { %v1345_v54 = vmul.f32 %v1300_v60, %v1121_v56 }
 0x23b   :  { %v1365_v63 = vadd.f32 %v1364_v31, %v1334_v15  ;;  %v1122_v50 = vmax.f32 %v1080_v33, 0.0 }
 0x23c   :  { %v861_v53 = vpop.permute.xlu0 %860 }
 0x23d   :  { %v1366_v51 = vadd.f32 %v1365_v63, %v1335_v42  ;;  %v1085_v39 = vadd.f32 %v1084_v12, %v861_v53  ;;  %v1305_v6 = vpop.permute.xlu1 %1304 }
 0x23e   :  { %v1346_v11 = vmul.f32 %v1305_v6, %v1122_v50 }
 0x23f   :  { %v1367_v22 = vadd.f32 %v1366_v51, %v1336_v43  ;;  %v1123_v34 = vmax.f32 %v1085_v39, 0.0 }
 0x240   :  { %v866_v3 = vpop.permute.xlu0 %865 }
 0x241   :  { %v1368_v29 = vadd.f32 %v1367_v22, %v1337_v35  ;;  %v1090_v30 = vadd.f32 %v1089_v40, %v866_v3  ;;  %v1315_v21 = vpop.permute.xlu1 %1314  ;;  %v1387_v40 = vstv %s2512_s6 }
 0x243   :  { %v1369_v7 = vadd.f32 %v1368_v29, %v1338_v32  ;;  %v1124_v20 = vmax.f32 %v1090_v30, 0.0 }
 0x244   :  { %v1310_v58 = vpop.permute.xlu0 %1309 }
 0x245   :  { %v1370_v16 = vadd.f32 %v1369_v7, %v1339_v62  ;;  %v1347_v2 = vmul.f32 %v1310_v58, %v1123_v34  ;;  %v1348_v23 = vmul.f32 %v1315_v21, %v1124_v20 }
 0x247   :  { %v1371_v48 = vadd.f32 %v1370_v16, %v1340_v10 }
 0x249   :  { %v1372_v14 = vadd.f32 %v1371_v48, %v1341_v19 }
 0x24b   :  { %v1373_v9 = vadd.f32 %v1372_v14, %v1342_v61 }
 0x24d   :  { %v1374_v57 = vadd.f32 %v1373_v9, %v1343_v49 }
 0x24f   :  { %v1375_v18 = vadd.f32 %v1374_v57, %v1344_v37 }
 0x251   :  { %v1376_v8 = vadd.f32 %v1375_v18, %v1345_v54 }
 0x253   :  { %v1377_v41 = vadd.f32 %v1376_v8, %v1346_v11 }
 0x255   :  { %v1378_v15 = vadd.f32 %v1377_v41, %v1347_v2 }
 0x257   :  { %v1379_v25 = vadd.f32 %v1378_v15, %v1348_v23 }
 0x259   :  { %v1380_v12 = vrot.slane %v1379_v25, 4 }
 0x25b   :  { %v1381_v31 = vadd.f32 %v1380_v12, %v1379_v25 }
 0x25d   :  { %v1382_v55 = vrot.slane %v1381_v31, 2 }
 0x25f   :  { %v1383_v42 = vadd.f32 %v1382_v55, %v1381_v31 }
 0x261   :  { %v1384_v52 = vrot.slane %v1383_v42, 1 }
 0x263   :  { %v1385_v4 = vadd.f32 %v1384_v52, %v1383_v42 }
 0x265   :  { %v1388_v63 = vadd.f32 %v1387_v40, %v1385_v4 }
 0x267   :  { %1389 = vst [vmem:[#allocation3] sm:$0x1] %v1388_v63 }
 0x268   :  { %1626 = shalt.err (!%p1623_p4)
}
 0x269   :  { %s1627_s29 = scalar_lea.hbm %s2513_s7, 16 }
 0x26a   :  { %p1628_p5 = scmp.ne.s32.totalorder %s2513_s7, %s1627_s29  ;;  %p1631_p6 = scmp.lt.u32.totalorder %s1627_s29, %s2513_s7 }
 0x26c   :  { %p1633_p7 = pnand %p1631_p6, %p1628_p5 }
 0x26e   :  { %1636 = shalt.err (!%p1633_p7)
}
 0x26f   :  { %1399 = dma.vmem_to_hbm [thread:$0]  %s1397_s24, 16, %s2513_s7, [#allocation4]  }
 0x270   :  { %1637 = dma.done.wait [#allocation4], 16  }
 0x271   :  { %1638 = vsyncadd [#allocation4], 4294967280 }
 0x272   :  { %1403 = vsyncpa [#allocation4], 1 }

</bundles_post_ra>
